<compile_context>
chip_gen: v6e
topology: v6e:2x2x1
jax: 0.10.0
libtpu: 0.0.40
codegen_flags: <defaults>
</compile_context>

<pallas_src>
import functools
import math

import jax
import jax.numpy as jnp
from jax.experimental import pallas as pl
from jax.experimental.pallas import tpu as pltpu


_LANE = 512                      # lane-dense last dim (multiple of 128)
_ROW_TILE = 1024                 # ~2 MiB f32 per operand tile
_CAT_LANE_TILE = 2048            # spatial tile for the 1x1-conv path (mult. of 256)
_VMEM_LIMIT = 32 * 1024 * 1024   # safe on v5e / v6e / v7x


# ----------------------------------------------------------------------------
# Kernels
# ----------------------------------------------------------------------------
def _ew_kernel(a_ref, b_ref, o_ref, *, mode):
    a = a_ref[...]
    b = b_ref[...]
    if mode == "add":
        o_ref[...] = a + b
    elif mode == "avg":
        o_ref[...] = (a + b) * 0.5
    elif mode == "max":
        o_ref[...] = jnp.maximum(a, b)
    else:
        raise ValueError(mode)


def _cat_conv1x1_mxu_kernel(v_ref, t_ref, w_ir_ref, w_vi_ref, b_ref, o_ref):
    # out = W_ir @ v + W_vi @ t + bias, spatial axis on lanes.  MXU path.
    a = v_ref[0]                                   # (C, T)
    b = t_ref[0]                                   # (C, T)
    acc = jnp.dot(w_ir_ref[...], a, preferred_element_type=jnp.float32)
    acc = acc + jnp.dot(w_vi_ref[...], b, preferred_element_type=jnp.float32)
    acc = acc + b_ref[...]                         # (C, 1) broadcasts over lanes
    o_ref[0] = acc.astype(o_ref.dtype)


def _cat_conv1x1_vpu_kernel(v_ref, t_ref, w_ir_ref, w_vi_ref, b_ref, o_ref, *, c):
    # For small C the MXU would be almost entirely drain; do an unrolled
    # broadcast-FMA over the C input channels on the VPU instead.
    a = v_ref[0].astype(jnp.float32)               # (C, T)
    b = t_ref[0].astype(jnp.float32)               # (C, T)
    w1 = w_ir_ref[...].astype(jnp.float32)         # (C_out, C_in)
    w2 = w_vi_ref[...].astype(jnp.float32)
    acc = jnp.zeros(a.shape, jnp.float32)
    for ci in range(c):                            # unrolled at trace time
        acc = acc + w1[:, ci:ci + 1] * a[ci:ci + 1, :]   # (C,1)*(1,T) -> (C,T)
        acc = acc + w2[:, ci:ci + 1] * b[ci:ci + 1, :]
    acc = acc + b_ref[...]                         # (C, 1)
    o_ref[0] = acc.astype(o_ref.dtype)


# ----------------------------------------------------------------------------
# pallas_call wrappers
# ----------------------------------------------------------------------------
def _elementwise_fuse_flat(a_flat, b_flat, mode):
    """Elementwise fusion on a flat 1-D buffer, via a lane-dense (rows, 512) slab."""
    total = a_flat.shape[0]
    pad = (-total) % _LANE
    if pad:  # static decision; only pays an extra pass on awkward sizes
        a_flat = jnp.pad(a_flat, (0, pad))
        b_flat = jnp.pad(b_flat, (0, pad))
    rows = (total + pad) // _LANE
    a2 = a_flat.reshape(rows, _LANE)
    b2 = b_flat.reshape(rows, _LANE)

    tm = min(rows, _ROW_TILE)                      # ~2 MiB f32 per operand tile
    grid = (pl.cdiv(rows, tm),)                    # padded tail handled by Pallas
    spec = pl.BlockSpec((tm, _LANE), lambda i: (i, 0))

    out2 = pl.pallas_call(
        functools.partial(_ew_kernel, mode=mode),
        out_shape=jax.ShapeDtypeStruct((rows, _LANE), a2.dtype),
        grid_spec=pltpu.PrefetchScalarGridSpec(
            num_scalar_prefetch=0,
            grid=grid,
            in_specs=[spec, spec],
            out_specs=spec,
        ),
        compiler_params=pltpu.CompilerParams(
            dimension_semantics=("parallel",),
            vmem_limit_bytes=_VMEM_LIMIT,
        ),
    )(a2, b2)

    out_flat = out2.reshape(rows * _LANE)
    if pad:
        out_flat = out_flat[:total]
    return out_flat


def _cat_conv_fuse(v, t, w_ir, w_vi, bias):
    """1x1 conv over concat(v, t) channels, in native NCHW layout (no transposes)."""
    n, c, h, w = v.shape
    hw = h * w
    v3 = v.reshape(n, c, hw)
    t3 = t.reshape(n, c, hw)

    t_hw = hw if hw <= _CAT_LANE_TILE else _CAT_LANE_TILE
    grid = (n, pl.cdiv(hw, t_hw))

    x_spec = pl.BlockSpec((1, c, t_hw), lambda i, j: (i, 0, j))
    w_spec = pl.BlockSpec((c, c), lambda i, j: (0, 0))       # constant block -> not re-fetched
    b_spec = pl.BlockSpec((c, 1), lambda i, j: (0, 0))

    if c < 128:
        kernel = functools.partial(_cat_conv1x1_vpu_kernel, c=c)
    else:
        kernel = _cat_conv1x1_mxu_kernel

    out3 = pl.pallas_call(
        kernel,
        out_shape=jax.ShapeDtypeStruct((n, c, hw), v.dtype),
        grid_spec=pltpu.PrefetchScalarGridSpec(
            num_scalar_prefetch=0,
            grid=grid,
            in_specs=[x_spec, x_spec, w_spec, w_spec, b_spec],
            out_specs=x_spec,
        ),
        compiler_params=pltpu.CompilerParams(
            dimension_semantics=("parallel", "parallel"),
            vmem_limit_bytes=_VMEM_LIMIT,
        ),
    )(v3, t3, w_ir, w_vi, bias)
    return out3.reshape(n, c, h, w)


# ----------------------------------------------------------------------------
# Fusion_strategy module equivalent
# ----------------------------------------------------------------------------
class FusionStrategyPallas:
    """JAX/Pallas port of mmdet Fusion_strategy."""

    def __init__(self, in_channels, key=None):
        if key is None:
            key = jax.random.PRNGKey(0)
        kw, kb = jax.random.split(key)
        c = in_channels
        # PyTorch Conv2d(2C, C, 1): weight (C_out, 2C_in, 1, 1), bias (C_out,)
        fan_in = 2 * c
        bound = 1.0 / math.sqrt(fan_in)
        w = jax.random.uniform(kw, (c, 2 * c), jnp.float32, -bound, bound)
        b = jax.random.uniform(kb, (c,), jnp.float32, -bound, bound)
        # torch.cat((en_ir, en_vi), 1): first C_in channels pair with v_feat (en_ir).
        # Kept in PyTorch (C_out, C_in) layout -- a checkpoint loader only needs to
        # squeeze the trailing 1x1 dims and split in half.
        self.w_ir = w[:, :c]                 # (C_out, C_in) applied to v_feat
        self.w_vi = w[:, c:]                 # (C_out, C_in) applied to t_feat
        self.bias = b.reshape(c, 1)          # (C, 1): broadcasts over spatial lanes
        self.in_channels = c

    # -- single-tensor paths -------------------------------------------------
    def _cat_single(self, v, t):
        assert v.shape == t.shape, "v_feat/t_feat shapes must match"
        assert v.shape[1] == self.in_channels
        return _cat_conv_fuse(v, t, self.w_ir, self.w_vi, self.bias)

    def _ew_single(self, v, t, fs_type):
        assert v.shape == t.shape, "v_feat/t_feat shapes must match"
        out_flat = _elementwise_fuse_flat(v.reshape(-1), t.reshape(-1), fs_type)
        return out_flat.reshape(v.shape)

    # -- public API ----------------------------------------------------------
    def __call__(self, v_feat, t_feat, fs_type):
        is_seq = isinstance(v_feat, (tuple, list))

        if fs_type in ("add", "avg", "max"):
            if is_seq:
                # Fuse all FPN levels with a single pallas_call: flatten each
                # level, concatenate, fuse, then split back (amortizes launch
                # and pipeline ramp-up over small levels).
                shapes = [tuple(v.shape) for v in v_feat]
                for v, t in zip(v_feat, t_feat):
                    assert v.shape == t.shape
                sizes = [math.prod(s) for s in shapes]
                a_flat = jnp.concatenate([v.reshape(-1) for v in v_feat])
                b_flat = jnp.concatenate([t.reshape(-1) for t in t_feat])
                fused = _elementwise_fuse_flat(a_flat, b_flat, fs_type)
                outs, off = [], 0
                for s, size in zip(shapes, sizes):
                    outs.append(fused[off:off + size].reshape(s))
                    off += size
                return outs
            return self._ew_single(v_feat, t_feat, fs_type)

        if fs_type == "cat":
            if is_seq:
                return [self._cat_single(v, t) for v, t in zip(v_feat, t_feat)]
            return self._cat_single(v_feat, t_feat)

        raise ValueError(f"unknown fs_type: {fs_type}")


# ----------------------------------------------------------------------------
# Reference (plain JAX) for sanity check
# ----------------------------------------------------------------------------
def _ref_fuse(module, v, t, fs_type):
    if fs_type == "add":
        return v + t
    if fs_type == "avg":
        return (v + t) / 2.0
    if fs_type == "max":
        return jnp.maximum(v, t)
    if fs_type == "cat":
        n, c, h, w = v.shape
        cat = jnp.concatenate([v, t], axis=1)                       # (N, 2C, H, W)
        wfull = jnp.concatenate([module.w_ir, module.w_vi], axis=1)  # (C, 2C)
        out = jnp.einsum("oc,nchw->nohw", wfull, cat,
                         precision=jax.lax.Precision.HIGHEST)
        return out + module.bias.reshape(1, c, 1, 1)
    raise ValueError(fs_type)


if __name__ == "__main__":
    key = jax.random.PRNGKey(0)
    k1, k2, k3, k4, kmod = jax.random.split(key, 5)

    N, C, H, W = 2, 4, 16, 16
    # Multi-scale feature list (like an FPN output), as the module supports.
    v_feat = [
        jax.random.normal(k1, (N, C, H, W), jnp.float32),
        jax.random.normal(k2, (N, C, H // 2, W // 2), jnp.float32),
    ]
    t_feat = [
        jax.random.normal(k3, (N, C, H, W), jnp.float32),
        jax.random.normal(k4, (N, C, H // 2, W // 2), jnp.float32),
    ]

    module = FusionStrategyPallas(in_channels=C, key=kmod)

    ok = True
    for fs_type in ("add", "avg", "max", "cat"):
        outs = module(v_feat, t_feat, fs_type)
        outs = [jax.block_until_ready(o) for o in outs]
        for o, v, t in zip(outs, v_feat, t_feat):
            ref = _ref_fuse(module, v, t, fs_type)
            if not jnp.allclose(o, ref, atol=1e-5, rtol=1e-5):
                ok = False

    # Single-tensor (non-list) path as well.
    for fs_type in ("add", "max", "cat"):
        single = jax.block_until_ready(module(v_feat[0], t_feat[0], fs_type))
        ref = _ref_fuse(module, v_feat[0], t_feat[0], fs_type)
        if not jnp.allclose(single, ref, atol=1e-5, rtol=1e-5):
            ok = False

    if ok:
        print("KERNEL_OK")
    else:
        print("KERNEL_MISMATCH")
</pallas_src>

<mosaic_0001>
module attributes {stable_mosaic.version = 11 : i64} {
  func.func @_ew_kernel(%arg0: i32, %arg1: memref<5x512xf32, #tpu.memory_space<vmem>>, %arg2: memref<5x512xf32, #tpu.memory_space<vmem>>, %arg3: memref<5x512xf32, #tpu.memory_space<vmem>>) attributes {dimension_semantics = [#tpu.dimension_semantics<parallel>], iteration_bounds = array<i64: 1>, scalar_prefetch = 0 : i64, scratch_operands = 0 : i64, tpu.core_type = #tpu.core_type<tc>, window_params = [{transform_indices = @transform_0, window_bounds = array<i64: 5, 512>}, {transform_indices = @transform_1, window_bounds = array<i64: 5, 512>}, {transform_indices = @transform_2, window_bounds = array<i64: 5, 512>}]} {
    %c0 = arith.constant 0 : index
    %c0_0 = arith.constant 0 : index
    %0 = vector.load %arg1[%c0, %c0_0] : memref<5x512xf32, #tpu.memory_space<vmem>>, vector<5x512xf32>
    %c0_1 = arith.constant 0 : index
    %c0_2 = arith.constant 0 : index
    %1 = vector.load %arg2[%c0_1, %c0_2] : memref<5x512xf32, #tpu.memory_space<vmem>>, vector<5x512xf32>
    %2 = arith.addf %0, %1 : vector<5x512xf32>
    %c0_3 = arith.constant 0 : index
    %c0_4 = arith.constant 0 : index
    %3 = vector.load %arg3[%c0_3, %c0_4] : memref<5x512xf32, #tpu.memory_space<vmem>>, vector<5x512xf32>
    tpu.vector_store %arg3[%c0_3, %c0_4], %2 {strides = array<i32>} : memref<5x512xf32, #tpu.memory_space<vmem>>, vector<5x512xf32>,
    return
  }
  func.func @transform_0(%arg0: i32) -> (i32, i32) {
    %c0_i32 = arith.constant 0 : i32
    %c0_i32_0 = arith.constant 0 : i32
    return %arg0, %c0_i32 : i32, i32
  }
  func.func @transform_1(%arg0: i32) -> (i32, i32) {
    %c0_i32 = arith.constant 0 : i32
    %c0_i32_0 = arith.constant 0 : i32
    return %arg0, %c0_i32 : i32, i32
  }
  func.func @transform_2(%arg0: i32) -> (i32, i32) {
    %c0_i32 = arith.constant 0 : i32
    %c0_i32_0 = arith.constant 0 : i32
    return %arg0, %c0_i32 : i32, i32
  }
}

</mosaic_0001>

<bundles_post_ra>
// kernel: tpu_custom_call.1
= control target key start
LH: loop header
LB: loop body
LE: loop exit
PB: predicated region body
PF: predicated region fallthrough
CT: control target
= control target key end

     0   :  { %7 = vsyncpa [#allocation3], 0  ;;  %s164_s0 = inlined_call_operand.hbm [shape: f32[5,512], index: 0, kind: input, shape index: {}]   ;;  %s165_s1 = inlined_call_operand.hbm [shape: f32[5,512], index: 1, kind: input, shape index: {}]   ;;  %s166_s2 = inlined_call_operand.hbm [shape: f32[5,512], index: 2, kind: output, shape index: {}]  }
   0x1   :  { %8 = vsyncpa [#allocation6], 0 }
   0x2   :  { %9 = vsyncpa [#allocation4], 0  ;;  %s137_s9 = smov [#allocation2]   ;;  %s138_s11 = smov [#allocation5]  }
   0x3   :  { %s16_s10 = sshll.u32 %s137_s9, 4  ;;  %s26_s12 = sshll.u32 %s138_s11, 4  ;;  %s17_s10 = int_to_ptr.vmem [resolvable:$true] %s16_s10  ;;  %s27_s12 = int_to_ptr.vmem [resolvable:$true] %s26_s12 }
   0x4   :  { %s79_s13 = scalar_lea.vmem %s17_s10, 512  ;;  %p84_p1 = scmp.lt.s32.totalorder %s17_s10, %s17_s10 }
   0x5   :  { %p80_p0 = scmp.ne.s32.totalorder %s17_s10, %s79_s13  ;;  %p85_p2 = scmp.lt.s32.totalorder %s79_s13, %s79_s13 }
   0x7   :  { %p86_p3 = por %p85_p2, %p84_p1 }
   0x9   :  { %p87_p4 = pnand %p86_p3, %p80_p0 }
   0xb   :  { %90 = shalt.err (!%p87_p4)
}
   0xc   :  { %19 = dma.hbm_to_vmem [thread:$0]  %s164_s0, 512, %s17_s10, [#allocation3]  }
   0xd   :  { %s99_s16 = scalar_lea.vmem %s27_s12, 512  ;;  %p104_p6 = scmp.lt.s32.totalorder %s27_s12, %s27_s12 }
   0xe   :  { %p100_p5 = scmp.ne.s32.totalorder %s27_s12, %s99_s16  ;;  %p105_p7 = scmp.lt.s32.totalorder %s99_s16, %s99_s16 }
  0x10   :  { %p106_p8 = por %p105_p7, %p104_p6 }
  0x12   :  { %p107_p9 = pnand %p106_p8, %p100_p5 }
  0x14   :  { %110 = shalt.err (!%p107_p9)
}
  0x15   :  { %29 = dma.hbm_to_vmem [thread:$0]  %s165_s1, 512, %s27_s12, [#allocation6]  }
  0x16   :  { %131 = dma.done.wait [#allocation3], 512  }
  0x17   :  { %132 = vsyncadd [#allocation3], 4294966784 }
  0x18   :  { %133 = dma.done.wait [#allocation6], 512  }
  0x19   :  { %134 = vsyncadd [#allocation6], 4294966784  ;;  %s139_s19 = smov [#allocation7]   ;;  %v36_v0 = vld [vmem:[#allocation2] sm:$0x1f] }
  0x1a   :  { %s58_s20 = sshll.u32 %s139_s19, 4  ;;  %v40_v1 = vld [vmem:[#allocation5] sm:$0x1f]  ;;  %v37_v2 = vld [vmem:[#allocation2 + $0x8] sm:$0x1f]  ;;  %s59_s20 = int_to_ptr.vmem [resolvable:$true] %s58_s20 }
  0x1b   :  { %v44_v3 = vadd.f32 %v40_v1, %v36_v0  ;;  %v41_v4 = vld [vmem:[#allocation5 + $0x8] sm:$0x1f]  ;;  %v38_v5 = vld [vmem:[#allocation2 + $0x10] sm:$0x1f]  ;;  %v39_v9 = vld [vmem:[#allocation2 + $0x18] sm:$0x1f]  ;;  %p116_p11 = scmp.lt.s32.totalorder %s59_s20, %s59_s20 }
  0x1c   :  { %v42_v6 = vld [vmem:[#allocation5 + $0x10] sm:$0x1f]  ;;  %v45_v7 = vadd.f32 %v41_v4, %v37_v2  ;;  %v43_v10 = vld [vmem:[#allocation5 + $0x18] sm:$0x1f]  ;;  %s111_s0 = scalar_lea.vmem %s59_s20, 512 }
  0x1d   :  { %v46_v8 = vadd.f32 %v42_v6, %v38_v5  ;;  %48 = vst [vmem:[#allocation7] sm:$0x1f] %v44_v3  ;;  %v47_v11 = vadd.f32 %v43_v10, %v39_v9  ;;  %p112_p10 = scmp.ne.s32.totalorder %s59_s20, %s111_s0  ;;  %p117_p12 = scmp.lt.s32.totalorder %s111_s0, %s111_s0 }
  0x1e   :  { %49 = vst [vmem:[#allocation7 + $0x8] sm:$0x1f] %v45_v7 }
  0x1f   :  { %50 = vst [vmem:[#allocation7 + $0x10] sm:$0x1f] %v46_v8  ;;  %51 = vst [vmem:[#allocation7 + $0x18] sm:$0x1f] %v47_v11  ;;  %p118_p13 = por %p117_p12, %p116_p11 }
  0x21   :  { %p119_p0 = pnand %p118_p13, %p112_p10 }
  0x23   :  { %122 = shalt.err (!%p119_p0)
}
  0x24   :  { %61 = dma.vmem_to_hbm [thread:$0]  %s59_s20, 512, %s166_s2, [#allocation4]  }
  0x25   :  { %135 = dma.done.wait [#allocation4], 512  }
  0x26   :  { %136 = vsyncadd [#allocation4], 4294966784 }
  0x27   :  { %65 = vsyncpa [#allocation3], 1 }
  0x28   :  { %66 = vsyncpa [#allocation6], 1 }
  0x29   :  { %67 = vsyncpa [#allocation4], 1 }

</bundles_post_ra>
